<compile_context>
chip_gen: v7x
topology: tpu7x:2x2x1
jax: 0.10.0
libtpu: 0.0.40
codegen_flags: <defaults>
</compile_context>

<pallas_src>
import jax
import jax.numpy as jnp
from jax.experimental import pallas as pl
from jax.experimental.pallas import tpu as pltpu


def _round_up(n, m):
    return ((n + m - 1) // m) * m


def _build_encoder_kernel(num_layers, padded_total, matmul_dtype):
    """Kernel: num_layers stacked Linear+Tanh, then cl1, one packed output."""

    def kernel(x_ref, *refs):
        # refs layout: w_0, b_0, ..., w_{L-1}, b_{L-1}, w_cl, b_cl, out_ref
        param_refs = refs[:2 * num_layers]
        wcl_ref = refs[2 * num_layers]
        bcl_ref = refs[2 * num_layers + 1]
        out_ref = refs[2 * num_layers + 2]

        x = x_ref[...]                                    # (TB, d_in) f32
        acts = []
        for i in range(num_layers):                       # static Python loop
            w = param_refs[2 * i][...]                    # (d_in_k, d_out_k), matmul_dtype
            b = param_refs[2 * i + 1][...]                # (1, d_out_k) f32
            acc = jnp.dot(x.astype(matmul_dtype), w,
                          preferred_element_type=jnp.float32)   # MXU, f32 acc
            x = jnp.tanh(acc + b)                         # f32 VPU + EUP path
            # dropout(p) in eval mode == identity
            acts.append(x)

        h = x                                             # == acts[-1]
        # cl1 with map_element_size=1:  y[:, j] = tanh(w_cl[j]*h[:, j] + b_cl[j])
        y_hat = jnp.tanh(h * wcl_ref[...] + bcl_ref[...])

        # Lane-dense packing: [y_hat | act_0 | ... | act_{L-1} | zero pad].
        packed = jnp.concatenate([y_hat] + acts, axis=-1)
        pad = padded_total - packed.shape[-1]
        if pad > 0:
            packed = jnp.pad(packed, ((0, 0), (0, pad)))
        out_ref[...] = packed                             # single unmasked store

    return kernel


def encoder_netw_forward(x, weights, biases, w_cl, b_cl,
                         *, matmul_dtype=jnp.float32, tb_max=512):
    """Pallas forward pass of encoder_netw (eval mode).

    Args:
      x:        (B, X_dim_in) float32
      weights:  list of (d_in_k, d_out_k) float32   (torch W_k already transposed)
      biases:   list of (1, d_out_k) float32
      w_cl:     (1, encoding_dim) float32  (per-element Linear(1,1) weights)
      b_cl:     (1, encoding_dim) float32
      matmul_dtype: jnp.float32 (default, exact parity) or jnp.bfloat16 for the
                    MXU inputs (recommended on v6e/v7x; accumulation is f32).
      tb_max:   max batch-tile rows per grid step.
    Returns:
      (y_hat, h, activations_list)   with h is activations_list[-1]
    """
    num_layers = len(weights)
    B, d_in = x.shape
    enc_dim = weights[-1].shape[1]
    act_dims = [w.shape[1] for w in weights]

    # Packed output slab: y_hat + all activations, padded to a lane multiple.
    total_cols = enc_dim + sum(act_dims)
    padded_total = _round_up(total_cols, 128)

    # Batch tiling: TB multiple of 8 (sublane), capped; pad batch if needed.
    TB = min(tb_max, _round_up(B, 8))
    pB = _round_up(B, TB)
    if pB != B:
        x = jnp.pad(x, ((0, pB - B), (0, 0)))
    grid = (pB // TB,)

    # Cast weights once at the wrapper level (halves weight DMA bytes for bf16).
    weights_c = [w.astype(matmul_dtype) for w in weights]

    inputs = [x]
    in_specs = [pl.BlockSpec((TB, d_in), lambda i: (i, 0))]
    for w, b in zip(weights_c, biases):
        inputs += [w, b]
        in_specs += [pl.BlockSpec(w.shape, lambda i: (0, 0)),
                     pl.BlockSpec(b.shape, lambda i: (0, 0))]
    inputs += [w_cl, b_cl]
    in_specs += [pl.BlockSpec(w_cl.shape, lambda i: (0, 0)),
                 pl.BlockSpec(b_cl.shape, lambda i: (0, 0))]

    out_shape = jax.ShapeDtypeStruct((pB, padded_total), jnp.float32)
    out_spec = pl.BlockSpec((TB, padded_total), lambda i: (i, 0))

    kernel = _build_encoder_kernel(num_layers, padded_total, matmul_dtype)

    slab = pl.pallas_call(
        kernel,
        out_shape=out_shape,
        grid=grid,
        in_specs=in_specs,
        out_specs=out_spec,
        compiler_params=pltpu.CompilerParams(
            # batch axis is embarrassingly parallel -> megacore sharding on v7x
            dimension_semantics=("parallel",),
            # tiles are small; 32 MiB fits the scoped default on all gens
            # (v7x: 64 MiB physical, 32 MiB scoped default).
            vmem_limit_bytes=32 * 1024 * 1024,
        ),
    )(*inputs)

    # Unpack in the wrapper (cheap XLA slices of the lane-dense slab).
    slab = slab[:B]
    y_hat = slab[:, :enc_dim]
    activations = []
    off = enc_dim
    for d in act_dims:
        activations.append(slab[:, off:off + d])
        off += d
    h = activations[-1]          # h duplicates the last activation by definition
    return y_hat, h, activations


def _reference_forward(x, weights, biases, w_cl, b_cl):
    acts = []
    for w, b in zip(weights, biases):
        x = jnp.tanh(x @ w + b)
        acts.append(x)
    h = x
    y_hat = jnp.tanh(h * w_cl + b_cl)
    return y_hat, h, acts


if __name__ == "__main__":
    # Module hyperparameters (defaults of encoder_netw, small X_dim_in).
    X_dim_in = 16
    map_layer_dims = [20]
    encoding_layer_dim = 10
    layer_dims = [X_dim_in] + map_layer_dims + [encoding_layer_dim]
    B = 8

    key = jax.random.PRNGKey(0)
    keys = jax.random.split(key, 2 * (len(layer_dims) - 1) + 3)

    # Deterministic synthetic parameters (nn.Linear shapes, W stored transposed).
    weights, biases = [], []
    ki = 0
    for i in range(len(layer_dims) - 1):
        d_in, d_out = layer_dims[i], layer_dims[i + 1]
        bound = 1.0 / float(jnp.sqrt(jnp.float32(d_in)))
        w = jax.random.uniform(keys[ki], (d_in, d_out), jnp.float32, -bound, bound)
        b = jax.random.uniform(keys[ki + 1], (1, d_out), jnp.float32, -bound, bound)
        weights.append(w)
        biases.append(b)
        ki += 2

    # cl1: HiddenElementsFinalLayer(encoding_layer_dim, 1) -> one Linear(1,1)
    # per encoding element: scalar weight + scalar bias each.
    w_cl = jax.random.uniform(keys[ki], (1, encoding_layer_dim), jnp.float32,
                              -1.0, 1.0)
    b_cl = jax.random.uniform(keys[ki + 1], (1, encoding_layer_dim), jnp.float32,
                              -1.0, 1.0)

    x = jax.random.normal(keys[ki + 2], (B, X_dim_in), jnp.float32)

    # f32 matmul path (exact parity with the reference).
    y_hat, h, acts = encoder_netw_forward(x, weights, biases, w_cl, b_cl)
    jax.block_until_ready((y_hat, h, acts))

    y_ref, h_ref, acts_ref = _reference_forward(x, weights, biases, w_cl, b_cl)
    assert jnp.allclose(y_hat, y_ref, atol=1e-5), "y_hat mismatch"
    assert jnp.allclose(h, h_ref, atol=1e-5), "encoding mismatch"
    for a, ar in zip(acts, acts_ref):
        assert jnp.allclose(a, ar, atol=1e-5), "activation mismatch"

    # bf16 MXU-input path (recommended default on v6e/v7x at real sizes).
    y_bf, h_bf, acts_bf = encoder_netw_forward(
        x, weights, biases, w_cl, b_cl, matmul_dtype=jnp.bfloat16)
    jax.block_until_ready((y_bf, h_bf, acts_bf))
    assert jnp.allclose(y_bf, y_ref, atol=1e-1), "bf16 y_hat mismatch"
    assert jnp.allclose(h_bf, h_ref, atol=1e-1), "bf16 encoding mismatch"

    print("KERNEL_OK")
</pallas_src>

<mosaic_0001>
module attributes {stable_mosaic.version = 11 : i64} {
  func.func @kernel(%arg0: i32, %arg1: memref<8x16xf32, #tpu.memory_space<vmem>>, %arg2: memref<16x20xf32, #tpu.memory_space<vmem>>, %arg3: memref<1x20xf32, #tpu.memory_space<vmem>>, %arg4: memref<20x10xf32, #tpu.memory_space<vmem>>, %arg5: memref<1x10xf32, #tpu.memory_space<vmem>>, %arg6: memref<1x10xf32, #tpu.memory_space<vmem>>, %arg7: memref<1x10xf32, #tpu.memory_space<vmem>>, %arg8: memref<8x128xf32, #tpu.memory_space<vmem>>) attributes {dimension_semantics = [#tpu.dimension_semantics<parallel>], iteration_bounds = array<i64: 1>, scalar_prefetch = 0 : i64, scratch_operands = 0 : i64, tpu.core_type = #tpu.core_type<tc>, window_params = [{transform_indices = @transform_0, window_bounds = array<i64: 8, 16>}, {pipeline_mode = #tpu.pipeline_mode<synchronous>, transform_indices = @transform_1, window_bounds = array<i64: 16, 20>}, {pipeline_mode = #tpu.pipeline_mode<synchronous>, transform_indices = @transform_2, window_bounds = array<i64: 1, 20>}, {pipeline_mode = #tpu.pipeline_mode<synchronous>, transform_indices = @transform_3, window_bounds = array<i64: 20, 10>}, {pipeline_mode = #tpu.pipeline_mode<synchronous>, transform_indices = @transform_4, window_bounds = array<i64: 1, 10>}, {pipeline_mode = #tpu.pipeline_mode<synchronous>, transform_indices = @transform_5, window_bounds = array<i64: 1, 10>}, {pipeline_mode = #tpu.pipeline_mode<synchronous>, transform_indices = @transform_6, window_bounds = array<i64: 1, 10>}, {transform_indices = @transform_7, window_bounds = array<i64: 8, 128>}]} {
    %c0 = arith.constant 0 : index
    %c0_0 = arith.constant 0 : index
    %0 = vector.load %arg1[%c0, %c0_0] : memref<8x16xf32, #tpu.memory_space<vmem>>, vector<8x16xf32>
    %c0_1 = arith.constant 0 : index
    %c0_2 = arith.constant 0 : index
    %1 = vector.load %arg2[%c0_1, %c0_2] : memref<16x20xf32, #tpu.memory_space<vmem>>, vector<16x20xf32>
    %c0_3 = arith.constant 0 : index
    %c0_4 = arith.constant 0 : index
    %2 = vector.load %arg3[%c0_3, %c0_4] : memref<1x20xf32, #tpu.memory_space<vmem>>, vector<1x20xf32>
    %cst = arith.constant dense<0.000000e+00> : vector<8x20xf32>
    %3 = tpu.matmul %0, %1, %cst {dimension_numbers = #tpu.dot_dimension_numbers<[1], [0], [0], [1], [0, 0, 1, 1], [], []>} : vector<8x16xf32>, vector<16x20xf32>, vector<8x20xf32> -> vector<8x20xf32>
    %4 = vector.broadcast %2 : vector<1x20xf32> to vector<8x20xf32>
    %5 = arith.addf %3, %4 : vector<8x20xf32>
    %6 = math.tanh %5 : vector<8x20xf32>
    %c0_5 = arith.constant 0 : index
    %c0_6 = arith.constant 0 : index
    %7 = vector.load %arg4[%c0_5, %c0_6] : memref<20x10xf32, #tpu.memory_space<vmem>>, vector<20x10xf32>
    %c0_7 = arith.constant 0 : index
    %c0_8 = arith.constant 0 : index
    %8 = vector.load %arg5[%c0_7, %c0_8] : memref<1x10xf32, #tpu.memory_space<vmem>>, vector<1x10xf32>
    %cst_9 = arith.constant dense<0.000000e+00> : vector<8x10xf32>
    %9 = tpu.matmul %6, %7, %cst_9 {dimension_numbers = #tpu.dot_dimension_numbers<[1], [0], [0], [1], [0, 0, 1, 1], [], []>} : vector<8x20xf32>, vector<20x10xf32>, vector<8x10xf32> -> vector<8x10xf32>
    %10 = vector.broadcast %8 : vector<1x10xf32> to vector<8x10xf32>
    %11 = arith.addf %9, %10 : vector<8x10xf32>
    %12 = math.tanh %11 : vector<8x10xf32>
    %c0_10 = arith.constant 0 : index
    %c0_11 = arith.constant 0 : index
    %13 = vector.load %arg6[%c0_10, %c0_11] : memref<1x10xf32, #tpu.memory_space<vmem>>, vector<1x10xf32>
    %14 = vector.broadcast %13 : vector<1x10xf32> to vector<8x10xf32>
    %15 = arith.mulf %12, %14 : vector<8x10xf32>
    %c0_12 = arith.constant 0 : index
    %c0_13 = arith.constant 0 : index
    %16 = vector.load %arg7[%c0_12, %c0_13] : memref<1x10xf32, #tpu.memory_space<vmem>>, vector<1x10xf32>
    %17 = vector.broadcast %16 : vector<1x10xf32> to vector<8x10xf32>
    %18 = arith.addf %15, %17 : vector<8x10xf32>
    %19 = math.tanh %18 : vector<8x10xf32>
    %20 = tpu.concatenate %19, %6, %12 in 1 : vector<8x10xf32>, vector<8x20xf32>, vector<8x10xf32> -> vector<8x40xf32>
    %c0_i32 = arith.constant 0 : i32
    %21 = arith.sitofp %c0_i32 : i32 to f32
    %22 = vector.broadcast %21 : f32 to vector<8x88xf32>
    %23 = tpu.concatenate %20, %22 in 1 : vector<8x40xf32>, vector<8x88xf32> -> vector<8x128xf32>
    %c0_14 = arith.constant 0 : index
    %c0_15 = arith.constant 0 : index
    %24 = vector.load %arg8[%c0_14, %c0_15] : memref<8x128xf32, #tpu.memory_space<vmem>>, vector<8x128xf32>
    tpu.vector_store %arg8[%c0_14, %c0_15], %23 {strides = array<i32>} : memref<8x128xf32, #tpu.memory_space<vmem>>, vector<8x128xf32>,
    return
  }
  func.func @transform_0(%arg0: i32) -> (i32, i32) {
    %c0_i32 = arith.constant 0 : i32
    %c0_i32_0 = arith.constant 0 : i32
    return %arg0, %c0_i32 : i32, i32
  }
  func.func @transform_1(%arg0: i32) -> (i32, i32) {
    %c0_i32 = arith.constant 0 : i32
    %c0_i32_0 = arith.constant 0 : i32
    %c0_i32_1 = arith.constant 0 : i32
    return %c0_i32, %c0_i32_0 : i32, i32
  }
  func.func @transform_2(%arg0: i32) -> (i32, i32) {
    %c0_i32 = arith.constant 0 : i32
    %c0_i32_0 = arith.constant 0 : i32
    %c0_i32_1 = arith.constant 0 : i32
    return %c0_i32, %c0_i32_0 : i32, i32
  }
  func.func @transform_3(%arg0: i32) -> (i32, i32) {
    %c0_i32 = arith.constant 0 : i32
    %c0_i32_0 = arith.constant 0 : i32
    %c0_i32_1 = arith.constant 0 : i32
    return %c0_i32, %c0_i32_0 : i32, i32
  }
  func.func @transform_4(%arg0: i32) -> (i32, i32) {
    %c0_i32 = arith.constant 0 : i32
    %c0_i32_0 = arith.constant 0 : i32
    %c0_i32_1 = arith.constant 0 : i32
    return %c0_i32, %c0_i32_0 : i32, i32
  }
  func.func @transform_5(%arg0: i32) -> (i32, i32) {
    %c0_i32 = arith.constant 0 : i32
    %c0_i32_0 = arith.constant 0 : i32
    %c0_i32_1 = arith.constant 0 : i32
    return %c0_i32, %c0_i32_0 : i32, i32
  }
  func.func @transform_6(%arg0: i32) -> (i32, i32) {
    %c0_i32 = arith.constant 0 : i32
    %c0_i32_0 = arith.constant 0 : i32
    %c0_i32_1 = arith.constant 0 : i32
    return %c0_i32, %c0_i32_0 : i32, i32
  }
  func.func @transform_7(%arg0: i32) -> (i32, i32) {
    %c0_i32 = arith.constant 0 : i32
    %c0_i32_0 = arith.constant 0 : i32
    return %arg0, %c0_i32 : i32, i32
  }
}

</mosaic_0001>

<bundles_post_ra>
// kernel: tpu_custom_call.1
= control target key start
LH: loop header
LB: loop body
LE: loop exit
PB: predicated region body
PF: predicated region fallthrough
CT: control target
= control target key end

     0   :  { %v318_v2 = vmov 0.0|0.0   ;;  %vm319_vm0 = vmmov 0   ;;  %v320_v4 = vmov 0.0   ;;  %s406_s0 = inlined_call_operand.vmem [shape: f32[8,16], index: 0, kind: input, shape index: {}]   ;;  %s407_s1 = inlined_call_operand.vmem [shape: f32[16,20], index: 1, kind: input, shape index: {}]   ;;  %s408_s2 = inlined_call_operand.vmem [shape: f32[1,20], index: 2, kind: input, shape index: {}]   ;;  %s409_s3 = inlined_call_operand.vmem [shape: f32[20,10], index: 3, kind: input, shape index: {}]   ;;  %s410_s4 = inlined_call_operand.vmem [shape: f32[1,10], index: 4, kind: input, shape index: {}]   ;;  %s411_s5 = inlined_call_operand.vmem [shape: f32[1,10], index: 5, kind: input, shape index: {}]   ;;  %s412_s6 = inlined_call_operand.vmem [shape: f32[1,10], index: 6, kind: input, shape index: {}]   ;;  %s413_s7 = inlined_call_operand.hbm [shape: f32[8,128], index: 7, kind: output, shape index: {}]  }
   0x1   :  { %v28_v0 = vld [vmem:[%s407_s1] sm:$0xff]  ;;  %v29_v1 = vld [vmem:[%s407_s1 + $0x8] sm:$0xff]  ;;  %276 = vmatprep.subr.bf16.mxu0 %v318_v2  ;;  %264 = vmatprep.mubr.msk.f32.mxu0 %vm319_vm0, %v320_v4 }
   0x2   :  { %v277_v3 = vpack.c.bf16 %v29_v1, %v28_v0 }
   0x3   :  { %12 = vsyncpa [#allocation3], 0  ;;  %279 = vmatprep.subr.bf16.mxu1 %v318_v2  ;;  %273 = vmatprep.mubr.msk.f32.mxu1 %vm319_vm0, %v320_v4  ;;  %v27_v5 = vld [vmem:[%s406_s0] sm:$0xff]  ;;  %vm37_vm1 = vcmask 130048   ;;  %v113_v7 = vld [vmem:[%s409_s3 + $0x8] sm:$0xff]  ;;  %vm126_vm2 = vcmask 1043456  }
   0x4   :  { %278 = vmatpush3.bf16.msra.mxu0 %v277_v3  ;;  %v112_v6 = vld [vmem:[%s409_s3] sm:$0xff]  ;;  %v114_v9 = vld [vmem:[%s409_s3 + $0x10] sm:$0xf]  ;;  %vm122_vm3 = vcmask 162816   ;;  %s321_s13 = smov 10   ;;  %s322_s3 = smov 30  }
   0x5   :  { %v280_v8 = vpack.c.bf16 %v113_v7, %v112_v6  ;;  %v246_v10 = vld [vmem:[%s408_s2] ss:$0 sm:$0xff]  ;;  %vm225_vm4 = vcmask 80896   ;;  %vm227_vm5 = vcmask 244736   ;;  %vm229_vm6 = vcmask 326656  }
   0x6   :  { %v248_v15 = vld [vmem:[%s410_s4] ss:$0 sm:$0xff]  ;;  %s323_s4 = smov [#allocation2]  }
   0x7   :  { %265 = vmatmul.mubr.msk.f32.vlgmr.msra.gmra.mrb[0].mxu0 %vm37_vm1, %v27_v5  ;;  %281 = vmatpush3.bf16.msra.mxu1 %v280_v8  ;;  %v251_v20 = vld [vmem:[%s411_s5] ss:$0 sm:$0xff]  ;;  %s238_s19 = sshll.u32 %s323_s4, 4  ;;  %s239_s19 = int_to_ptr.vmem [resolvable:$true] %s238_s19 }
   0x8   :  { %271 = vmatprep.subr.mxu1 %v320_v4  ;;  %v252_v22 = vld [vmem:[%s412_s6] ss:$0 sm:$0xff]  ;;  %s294_s5 = scalar_lea.vmem %s239_s19, 128  ;;  %p299_p1 = scmp.lt.s32.totalorder %s239_s19, %s239_s19 }
   0x9   :  { %p295_p0 = scmp.ne.s32.totalorder %s239_s19, %s294_s5  ;;  %p300_p2 = scmp.lt.s32.totalorder %s294_s5, %s294_s5 }
   0xb   :  { %272 = vmatpush3.msk.msra.mxu1 %vm126_vm2, %v114_v9  ;;  %p301_p3 = por %p300_p2, %p299_p1 }
   0xd   :  { %p302_p4 = pnand %p301_p3, %p295_p0 }
  0xda   :  { %v107_v11 = vpop.f32.mrb[0].mxu0 }
  0xdb   :  { %v108_v12 = vadd.f32 %v246_v10, %v107_v11  ;;  %v266_v13 = vpop.f32.mrb[1].mxu0 }
  0xdd   :  { %288 = vtanh.f32 %v108_v12 }
  0xe7   :  { %v289_v14 = vpop.eup %288 }
  0xe8   :  { %218 = vrot.lane.b32.xlu0 %v289_v14, %s321_s13  ;;  %274 = vmatmul.mubr.msk.f32.vlgmr.msra.gmra.mrb[0].mxu1 %vm122_vm3, %v289_v14 }
 0x15a   :  { %v219_v24 = vpop.permute.xlu0 %218 }
 0x1bb   :  { %v196_v16 = vpop.f32.mrb[0].mxu1 }
 0x1bc   :  { %v197_v17 = vadd.f32 %v248_v15, %v196_v16  ;;  %v275_v18 = vpop.f32.mrb[1].mxu1 }
 0x1be   :  { %290 = vtanh.f32 %v197_v17 }
 0x1c8   :  { %v291_v19 = vpop.eup %290 }
 0x1c9   :  { %222 = vrot.lane.b32.xlu0 %v291_v19, %s322_s3  ;;  %v208_v21 = vmul.f32 %v291_v19, %v251_v20 }
 0x1cb   :  { %v216_v23 = vadd.f32 %v252_v22, %v208_v21 }
 0x1cd   :  { %292 = vtanh.f32 %v216_v23 }
 0x1d7   :  { %v293_v25 = vpop.eup %292 }
 0x1d8   :  { %v226_v27 = vsel %vm225_vm4, %v293_v25, %v219_v24 }
 0x23b   :  { %v223_v26 = vpop.permute.xlu0 %222 }
 0x23c   :  { %v228_v28 = vsel %vm227_vm5, %v226_v27, %v223_v26 }
 0x23d   :  { %v230_v29 = vsel %vm229_vm6, %v228_v28, 0.0 }
 0x23e   :  { %231 = vst [vmem:[#allocation2] sm:$0xff] %v230_v29 }
 0x23f   :  { %305 = shalt.err (!%p302_p4)
}
 0x240   :  { %s306_s21 = scalar_lea.hbm %s413_s7, 128 }
 0x241   :  { %p307_p5 = scmp.ne.s32.totalorder %s413_s7, %s306_s21  ;;  %p310_p6 = scmp.lt.u32.totalorder %s306_s21, %s413_s7 }
 0x243   :  { %p312_p7 = pnand %p310_p6, %p307_p5 }
 0x245   :  { %315 = shalt.err (!%p312_p7)
}
 0x246   :  { %241 = dma.vmem_to_hbm [thread:$0]  %s239_s19, 128, %s413_s7, [#allocation3]  }
 0x247   :  { %316 = dma.done.wait [#allocation3], 128  }
 0x248   :  { %317 = vsyncadd [#allocation3], 4294967168 }
 0x249   :  { %245 = vsyncpa [#allocation3], 1 }

</bundles_post_ra>
